<compile_context>
chip_gen: v6e
topology: v6e:2x2x1
jax: 0.10.0
libtpu: 0.0.40
codegen_flags: <defaults>
</compile_context>

<pallas_src>
import functools
import math

import jax
import jax.numpy as jnp
from jax import lax
from jax.experimental import pallas as pl
from jax.experimental.pallas import tpu as pltpu


ENCODER_HIDDEN_SIZE = 10
XF_FEATURE_NUM = 6                       # synthetic choice -> input_dim = 16
INPUT_DIM = ENCODER_HIDDEN_SIZE + XF_FEATURE_NUM
HIDDEN_DIM = 64
NUM_QUANTILES = 3                        # len([0.1, 0.5, 0.9])

# Largest batch tile used by default (safe on every generation incl. v7x).
_MAX_BLOCK_M = 16 * 1024
# Once at least this many rows per TensorCore are available, prefer >= 2 grid
# steps so dimension_semantics=("parallel",) can shard across v7x's 2 TCs.
_MIN_ROWS_PER_CORE = 1024


def _round_up(x, m):
    return ((x + m - 1) // m) * m


def _choose_block_m(batch, block_m):
    """Adaptive batch tile (multiple of 128), clamped to the padded batch."""
    if block_m is not None:
        bm = _round_up(max(block_m, 128), 128)
    else:
        bm = min(_round_up(batch, 128), _MAX_BLOCK_M)
        # v7x megacore: keep >= 2 grid steps once there's enough work to split.
        if batch >= 2 * _MIN_ROWS_PER_CORE and pl.cdiv(batch, bm) < 2:
            bm = _round_up(pl.cdiv(batch, 2), 128)
    return min(bm, _round_up(batch, 128))


def _mlp_kernel(x_ref, w1_ref, b1_ref, w2_ref, b2_ref, w3_ref, b3_ref, o_ref):
    """Fused 3-layer MLP on one batch tile.

    x arrives untransposed ([block_m, in_dim], torch layout); layer 1
    contracts the last dims of W1 [hid, in] and x [bm, in] directly, so all
    activations live batch-in-lanes ([features, bm]) without any transpose
    and the final store is the lane-dense [nq, bm] layout.
    """
    x = x_ref[...].astype(jnp.bfloat16)                        # [bm, in] bf16

    # Layer 1: contract in_dim of W1 and x (einsum 'ok,bk->ob') + b1, ReLU.
    # Dropout = identity in eval mode.
    h1 = lax.dot_general(w1_ref[...], x, (((1,), (1,)), ((), ())),
                         preferred_element_type=jnp.float32)   # [hid, bm] f32
    h1 = jnp.maximum(h1 + b1_ref[...], 0.0).astype(jnp.bfloat16)

    # Layer 2: W2 @ H1 + b2, ReLU.
    h2 = jnp.dot(w2_ref[...], h1, preferred_element_type=jnp.float32)
    h2 = jnp.maximum(h2 + b2_ref[...], 0.0).astype(jnp.bfloat16)

    # Layer 3: W3 @ H2 + b3 -> lane-dense [nq, bm] bf16 store.
    out = jnp.dot(w3_ref[...], h2, preferred_element_type=jnp.float32)
    o_ref[...] = (out + b3_ref[...]).astype(o_ref.dtype)


@functools.partial(jax.jit, static_argnames=("block_m",))
def global_mlp(x, params, block_m=None):
    """x: [batch, INPUT_DIM] float32 -> [batch, NUM_QUANTILES] float32."""
    w1, b1, w2, b2, w3, b3 = params   # weights [out, in] bf16, biases [out, 1] f32
    batch, in_dim = x.shape
    hid, hid2, nq = w1.shape[0], w2.shape[0], w3.shape[0]

    bm = _choose_block_m(batch, block_m)
    grid = (pl.cdiv(batch, bm),)      # ragged last tile handled by Pallas masking

    in_specs = [
        pl.BlockSpec((bm, in_dim),  lambda i: (i, 0)),   # x tile, torch layout
        pl.BlockSpec((hid, in_dim), lambda i: (0, 0)),   # W1 [out, in]
        pl.BlockSpec((hid, 1),      lambda i: (0, 0)),   # b1 [out, 1]
        pl.BlockSpec((hid2, hid),   lambda i: (0, 0)),   # W2
        pl.BlockSpec((hid2, 1),     lambda i: (0, 0)),   # b2
        pl.BlockSpec((nq, hid2),    lambda i: (0, 0)),   # W3
        pl.BlockSpec((nq, 1),       lambda i: (0, 0)),   # b3
    ]
    out_spec = pl.BlockSpec((nq, bm), lambda i: (0, i))  # lane-dense output

    out_t = pl.pallas_call(
        _mlp_kernel,
        out_shape=jax.ShapeDtypeStruct((nq, batch), jnp.bfloat16),
        grid_spec=pltpu.PrefetchScalarGridSpec(
            num_scalar_prefetch=0,
            grid=grid,
            in_specs=in_specs,
            out_specs=out_spec,
        ),
        compiler_params=pltpu.CompilerParams(
            dimension_semantics=("parallel",),   # shards grid steps across TCs
            vmem_limit_bytes=32 * 1024 * 1024,   # >> ~10 MiB footprint @ bm=16384
        ),
    )(x, w1, b1, w2, b2, w3, b3)

    # Single fused transpose+convert back to the torch layout/dtype.
    return jnp.swapaxes(out_t, 0, 1).astype(jnp.float32)


def init_params(key):
    """torch.nn.Linear-style init. Weights stored torch-native [out, in] in
    bf16; biases stored [out, 1] in f32."""
    def linear(key, fan_in, fan_out):
        kw, kb = jax.random.split(key)
        bound = 1.0 / math.sqrt(fan_in)
        w = jax.random.uniform(kw, (fan_out, fan_in), jnp.float32, -bound, bound)
        b = jax.random.uniform(kb, (fan_out, 1), jnp.float32, -bound, bound)
        return w.astype(jnp.bfloat16), b

    k1, k2, k3 = jax.random.split(key, 3)
    w1, b1 = linear(k1, INPUT_DIM, HIDDEN_DIM)
    w2, b2 = linear(k2, HIDDEN_DIM, HIDDEN_DIM // 2)
    w3, b3 = linear(k3, HIDDEN_DIM // 2, NUM_QUANTILES)
    return (w1, b1, w2, b2, w3, b3)


def reference_mlp(x, params):
    """Pure-JAX reference mirroring the kernel's bf16-in / f32-accumulate math."""
    w1, b1, w2, b2, w3, b3 = params
    xb = x.astype(jnp.bfloat16)
    h1 = jnp.maximum(
        lax.dot_general(w1, xb, (((1,), (1,)), ((), ())),
                        preferred_element_type=jnp.float32) + b1, 0.0
    ).astype(jnp.bfloat16)
    h2 = jnp.maximum(
        jnp.dot(w2, h1, preferred_element_type=jnp.float32) + b2, 0.0
    ).astype(jnp.bfloat16)
    out = (jnp.dot(w3, h2, preferred_element_type=jnp.float32) + b3
           ).astype(jnp.bfloat16)
    return jnp.swapaxes(out, 0, 1).astype(jnp.float32)


if __name__ == "__main__":
    key = jax.random.PRNGKey(0)
    k_params, k_x1, k_x2 = jax.random.split(key, 3)

    params = init_params(k_params)

    # Case 1: batch divides the tile exactly (single grid step, default bm).
    batch1 = 128
    x1 = jax.random.normal(k_x1, (batch1, INPUT_DIM), jnp.float32)
    out1 = jax.block_until_ready(global_mlp(x1, params))
    ref1 = reference_mlp(x1, params)
    assert out1.shape == (batch1, NUM_QUANTILES), out1.shape
    assert jnp.allclose(out1, ref1, atol=2e-2, rtol=2e-2), "mismatch (case 1)"

    # Case 2: ragged batch + multi-step grid (block_m override), exercising
    # the Pallas masked last tile that replaces the old wrapper-side jnp.pad.
    batch2 = 200
    x2 = jax.random.normal(k_x2, (batch2, INPUT_DIM), jnp.float32)
    out2 = jax.block_until_ready(global_mlp(x2, params, block_m=128))
    ref2 = reference_mlp(x2, params)
    assert out2.shape == (batch2, NUM_QUANTILES), out2.shape
    assert jnp.allclose(out2, ref2, atol=2e-2, rtol=2e-2), "mismatch (case 2)"

    print("KERNEL_OK")
</pallas_src>

<mosaic_0001>
module attributes {stable_mosaic.version = 11 : i64} {
  func.func @_mlp_kernel(%arg0: i32, %arg1: memref<128x16xf32, #tpu.memory_space<vmem>>, %arg2: memref<64x16xbf16, #tpu.memory_space<vmem>>, %arg3: memref<64x1xf32, #tpu.memory_space<vmem>>, %arg4: memref<32x64xbf16, #tpu.memory_space<vmem>>, %arg5: memref<32x1xf32, #tpu.memory_space<vmem>>, %arg6: memref<3x32xbf16, #tpu.memory_space<vmem>>, %arg7: memref<3x1xf32, #tpu.memory_space<vmem>>, %arg8: memref<3x128xbf16, #tpu.memory_space<vmem>>) attributes {dimension_semantics = [#tpu.dimension_semantics<parallel>], iteration_bounds = array<i64: 1>, scalar_prefetch = 0 : i64, scratch_operands = 0 : i64, tpu.core_type = #tpu.core_type<tc>, window_params = [{transform_indices = @transform_0, window_bounds = array<i64: 128, 16>}, {pipeline_mode = #tpu.pipeline_mode<synchronous>, transform_indices = @transform_1, window_bounds = array<i64: 64, 16>}, {pipeline_mode = #tpu.pipeline_mode<synchronous>, transform_indices = @transform_2, window_bounds = array<i64: 64, 1>}, {pipeline_mode = #tpu.pipeline_mode<synchronous>, transform_indices = @transform_3, window_bounds = array<i64: 32, 64>}, {pipeline_mode = #tpu.pipeline_mode<synchronous>, transform_indices = @transform_4, window_bounds = array<i64: 32, 1>}, {pipeline_mode = #tpu.pipeline_mode<synchronous>, transform_indices = @transform_5, window_bounds = array<i64: 3, 32>}, {pipeline_mode = #tpu.pipeline_mode<synchronous>, transform_indices = @transform_6, window_bounds = array<i64: 3, 1>}, {transform_indices = @transform_7, window_bounds = array<i64: 3, 128>}]} {
    %c0 = arith.constant 0 : index
    %c0_0 = arith.constant 0 : index
    %0 = vector.load %arg1[%c0, %c0_0] : memref<128x16xf32, #tpu.memory_space<vmem>>, vector<128x16xf32>
    %1 = arith.truncf %0 : vector<128x16xf32> to vector<128x16xbf16>
    %c0_1 = arith.constant 0 : index
    %c0_2 = arith.constant 0 : index
    %2 = vector.load %arg2[%c0_1, %c0_2] : memref<64x16xbf16, #tpu.memory_space<vmem>>, vector<64x16xbf16>
    %cst = arith.constant dense<0.000000e+00> : vector<64x128xf32>
    %3 = tpu.matmul %2, %1, %cst {dimension_numbers = #tpu.dot_dimension_numbers<[1], [1], [0], [0], [0, 0, 1, 0], [], []>} : vector<64x16xbf16>, vector<128x16xbf16>, vector<64x128xf32> -> vector<64x128xf32>
    %c0_3 = arith.constant 0 : index
    %c0_4 = arith.constant 0 : index
    %4 = vector.load %arg3[%c0_3, %c0_4] : memref<64x1xf32, #tpu.memory_space<vmem>>, vector<64x1xf32>
    %5 = vector.broadcast %4 : vector<64x1xf32> to vector<64x128xf32>
    %6 = arith.addf %3, %5 : vector<64x128xf32>
    %cst_5 = arith.constant 0.000000e+00 : f32
    %7 = vector.broadcast %cst_5 : f32 to vector<64x128xf32>
    %8 = arith.maximumf %6, %7 : vector<64x128xf32>
    %9 = arith.truncf %8 : vector<64x128xf32> to vector<64x128xbf16>
    %c0_6 = arith.constant 0 : index
    %c0_7 = arith.constant 0 : index
    %10 = vector.load %arg4[%c0_6, %c0_7] : memref<32x64xbf16, #tpu.memory_space<vmem>>, vector<32x64xbf16>
    %cst_8 = arith.constant dense<0.000000e+00> : vector<32x128xf32>
    %11 = tpu.matmul %10, %9, %cst_8 {dimension_numbers = #tpu.dot_dimension_numbers<[1], [0], [0], [1], [0, 0, 1, 1], [], []>} : vector<32x64xbf16>, vector<64x128xbf16>, vector<32x128xf32> -> vector<32x128xf32>
    %c0_9 = arith.constant 0 : index
    %c0_10 = arith.constant 0 : index
    %12 = vector.load %arg5[%c0_9, %c0_10] : memref<32x1xf32, #tpu.memory_space<vmem>>, vector<32x1xf32>
    %13 = vector.broadcast %12 : vector<32x1xf32> to vector<32x128xf32>
    %14 = arith.addf %11, %13 : vector<32x128xf32>
    %cst_11 = arith.constant 0.000000e+00 : f32
    %15 = vector.broadcast %cst_11 : f32 to vector<32x128xf32>
    %16 = arith.maximumf %14, %15 : vector<32x128xf32>
    %17 = arith.truncf %16 : vector<32x128xf32> to vector<32x128xbf16>
    %c0_12 = arith.constant 0 : index
    %c0_13 = arith.constant 0 : index
    %18 = vector.load %arg6[%c0_12, %c0_13] : memref<3x32xbf16, #tpu.memory_space<vmem>>, vector<3x32xbf16>
    %cst_14 = arith.constant dense<0.000000e+00> : vector<3x128xf32>
    %19 = tpu.matmul %18, %17, %cst_14 {dimension_numbers = #tpu.dot_dimension_numbers<[1], [0], [0], [1], [0, 0, 1, 1], [], []>} : vector<3x32xbf16>, vector<32x128xbf16>, vector<3x128xf32> -> vector<3x128xf32>
    %c0_15 = arith.constant 0 : index
    %c0_16 = arith.constant 0 : index
    %20 = vector.load %arg7[%c0_15, %c0_16] : memref<3x1xf32, #tpu.memory_space<vmem>>, vector<3x1xf32>
    %21 = vector.broadcast %20 : vector<3x1xf32> to vector<3x128xf32>
    %22 = arith.addf %19, %21 : vector<3x128xf32>
    %23 = arith.truncf %22 : vector<3x128xf32> to vector<3x128xbf16>
    %c0_17 = arith.constant 0 : index
    %c0_18 = arith.constant 0 : index
    %24 = vector.load %arg8[%c0_17, %c0_18] : memref<3x128xbf16, #tpu.memory_space<vmem>>, vector<3x128xbf16>
    tpu.vector_store %arg8[%c0_17, %c0_18], %23 {strides = array<i32>} : memref<3x128xbf16, #tpu.memory_space<vmem>>, vector<3x128xbf16>,
    return
  }
  func.func @transform_0(%arg0: i32) -> (i32, i32) {
    %c0_i32 = arith.constant 0 : i32
    %c0_i32_0 = arith.constant 0 : i32
    return %arg0, %c0_i32 : i32, i32
  }
  func.func @transform_1(%arg0: i32) -> (i32, i32) {
    %c0_i32 = arith.constant 0 : i32
    %c0_i32_0 = arith.constant 0 : i32
    %c0_i32_1 = arith.constant 0 : i32
    return %c0_i32, %c0_i32_0 : i32, i32
  }
  func.func @transform_2(%arg0: i32) -> (i32, i32) {
    %c0_i32 = arith.constant 0 : i32
    %c0_i32_0 = arith.constant 0 : i32
    %c0_i32_1 = arith.constant 0 : i32
    return %c0_i32, %c0_i32_0 : i32, i32
  }
  func.func @transform_3(%arg0: i32) -> (i32, i32) {
    %c0_i32 = arith.constant 0 : i32
    %c0_i32_0 = arith.constant 0 : i32
    %c0_i32_1 = arith.constant 0 : i32
    return %c0_i32, %c0_i32_0 : i32, i32
  }
  func.func @transform_4(%arg0: i32) -> (i32, i32) {
    %c0_i32 = arith.constant 0 : i32
    %c0_i32_0 = arith.constant 0 : i32
    %c0_i32_1 = arith.constant 0 : i32
    return %c0_i32, %c0_i32_0 : i32, i32
  }
  func.func @transform_5(%arg0: i32) -> (i32, i32) {
    %c0_i32 = arith.constant 0 : i32
    %c0_i32_0 = arith.constant 0 : i32
    %c0_i32_1 = arith.constant 0 : i32
    return %c0_i32, %c0_i32_0 : i32, i32
  }
  func.func @transform_6(%arg0: i32) -> (i32, i32) {
    %c0_i32 = arith.constant 0 : i32
    %c0_i32_0 = arith.constant 0 : i32
    %c0_i32_1 = arith.constant 0 : i32
    return %c0_i32, %c0_i32_0 : i32, i32
  }
  func.func @transform_7(%arg0: i32) -> (i32, i32) {
    %c0_i32 = arith.constant 0 : i32
    %c0_i32_0 = arith.constant 0 : i32
    return %c0_i32, %arg0 : i32, i32
  }
}

</mosaic_0001>

<bundles_post_ra>
// kernel: global_mlp.1
= control target key start
LH: loop header
LB: loop body
LE: loop exit
PB: predicated region body
PF: predicated region fallthrough
CT: control target
= control target key end

     0   :  { %vm127_vm0 = vcmask 130048   ;;  %v500_v3 = vmov 0   ;;  %vm279_vm1 = vcmask 523264   ;;  %vm502_vm2 = vmmov 0   ;;  %s679_s0 = inlined_call_operand.vmem [shape: f32[128,16], index: 0, kind: input, shape index: {}]   ;;  %s680_s1 = inlined_call_operand.vmem [shape: bf16[64,16], index: 1, kind: input, shape index: {}]   ;;  %s681_s2 = inlined_call_operand.vmem [shape: f32[64,1], index: 2, kind: input, shape index: {}]   ;;  %s682_s4 = inlined_call_operand.vmem [shape: f32[32,1], index: 4, kind: input, shape index: {}]   ;;  %s683_s6 = inlined_call_operand.vmem [shape: f32[3,1], index: 6, kind: input, shape index: {}]   ;;  %s684_s3 = inlined_call_operand.vmem [shape: bf16[32,64], index: 3, kind: input, shape index: {}]   ;;  %s685_s5 = inlined_call_operand.vmem [shape: bf16[3,32], index: 5, kind: input, shape index: {}]   ;;  %s686_s7 = inlined_call_operand.vmem [shape: bf16[3,128], index: 7, kind: output, shape index: {}]  }
   0x1   :  { %v41_v0 = vld [vmem:[%s679_s0 + $0x70] sm:$0xff]  ;;  %v42_v1 = vld [vmem:[%s679_s0 + $0x78] sm:$0xff]  ;;  %v39_v2 = vld [vmem:[%s679_s0 + $0x60] sm:$0xff]  ;;  %492 = vset.pattern.permute.xlu0 %v500_v3  ;;  %493 = vset.pattern.permute.xlu1 %v500_v3  ;;  %vm348_vm3 = vcmask 261120   ;;  %vm393_vm4 = vcmask 1041408  }
   0x2   :  { %v50_v4 = vpack.c.bf16 %v42_v1, %v41_v0  ;;  %v40_v5 = vld [vmem:[%s679_s0 + $0x68] sm:$0xff]  ;;  %v37_v8 = vld [vmem:[%s679_s0 + $0x50] sm:$0xff]  ;;  %v38_v9 = vld [vmem:[%s679_s0 + $0x58] sm:$0xff]  ;;  %vm394_vm5 = vsmask.f32 1280 }
   0x3   :  { %v49_v6 = vpack.c.bf16 %v40_v5, %v39_v2  ;;  %v494_v10 = vld [vmem:[%s680_s1] sm:$0xff]   ;;  %v48_v12 = vpack.c.bf16 %v38_v9, %v37_v8  ;;  %v65_v13 = vld [vmem:[%s681_s2 + $0x30] sm:$0xff]  ;;  %v66_v15 = vld [vmem:[%s681_s2 + $0x38] sm:$0xff] }
   0x4   :  { %481 = vmatprep.subr.msk.bf16.mxu0 %vm127_vm0, %v50_v4  ;;  %v162_v7 = vsel %vm127_vm0, %v50_v4, 0  ;;  %453 = vmatprep.mubr.msk.bf16.mxu0 %vm127_vm0, %v494_v10  ;;  %v63_v14 = vld [vmem:[%s681_s2 + $0x20] sm:$0xff]  ;;  %v64_v16 = vld [vmem:[%s681_s2 + $0x28] sm:$0xff]  ;;  %v61_v19 = vld [vmem:[%s681_s2 + $0x10] sm:$0xff] }
   0x5   :  { %438 = vmatpush3.bf16.xpose.msra.mxu0 %v162_v7  ;;  %v159_v11 = vsel %vm127_vm0, %v49_v6, 0  ;;  %99 = vperm.xlu0 %492, %v65_v13   ;;  %v35_v17 = vld [vmem:[%s679_s0 + $0x40] sm:$0xff]  ;;  %v36_v18 = vld [vmem:[%s679_s0 + $0x48] sm:$0xff]  ;;  %v62_v20 = vld [vmem:[%s681_s2 + $0x18] sm:$0xff]  ;;  %v156_v21 = vsel %vm127_vm0, %v48_v12, 0 }
   0x6   :  { %482 = vmatprep.subr.msk.bf16.mxu0 %vm127_vm0, %v49_v6  ;;  %89 = vperm.xlu1 %493, %v63_v14   ;;  %v47_v22 = vpack.c.bf16 %v36_v18, %v35_v17  ;;  %v59_v23 = vld [vmem:[%s681_s2] sm:$0xff]  ;;  %v60_v24 = vld [vmem:[%s681_s2 + $0x8] sm:$0xff]  ;;  %v33_v25 = vld [vmem:[%s679_s0 + $0x30] sm:$0xff] }
   0x7   :  { %v34_v26 = vld [vmem:[%s679_s0 + $0x38] sm:$0xff]  ;;  %v247_v27 = vld [vmem:[%s682_s4 + $0x10] sm:$0xff]  ;;  %v245_v31 = vld [vmem:[%s682_s4] sm:$0xff] }
   0x8   :  { %v248_v28 = vld [vmem:[%s682_s4 + $0x18] sm:$0xff]  ;;  %v153_v29 = vsel %vm127_vm0, %v47_v22, 0  ;;  %v46_v30 = vpack.c.bf16 %v34_v26, %v33_v25  ;;  %v246_v32 = vld [vmem:[%s682_s4 + $0x8] sm:$0xff]  ;;  %v31_v33 = vld [vmem:[%s679_s0 + $0x20] sm:$0xff] }
   0x9   :  { %104 = vperm.xlu0 %492, %v66_v15   ;;  %v32_v34 = vld [vmem:[%s679_s0 + $0x28] sm:$0xff]  ;;  %v342_v35 = vld [vmem:[%s683_s6] sm:$0x7]  ;;  %v29_v38 = vld [vmem:[%s679_s0 + $0x10] sm:$0xff] }
   0xa   :  { %94 = vperm.xlu1 %493, %v64_v16   ;;  %v150_v36 = vsel %vm127_vm0, %v46_v30, 0  ;;  %v45_v37 = vpack.c.bf16 %v32_v34, %v31_v33  ;;  %v30_v39 = vld [vmem:[%s679_s0 + $0x18] sm:$0xff]  ;;  %v27_v42 = vld [vmem:[%s679_s0] sm:$0xff]  ;;  %v28_v43 = vld [vmem:[%s679_s0 + $0x8] sm:$0xff] }
   0xb   :  { %v44_v41 = vpack.c.bf16 %v30_v39, %v29_v38  ;;  %v43_v45 = vpack.c.bf16 %v28_v43, %v27_v42  ;;  %v495_v47 = vld [vmem:[%s680_s1 + $0x8] sm:$0xff]   ;;  %v496_v48 = vld [vmem:[%s680_s1 + $0x10] sm:$0xff]   ;;  %v497_v49 = vld [vmem:[%s680_s1 + $0x18] sm:$0xff]  }
   0xc   :  { %v147_v40 = vsel %vm127_vm0, %v45_v37, 0  ;;  %v498_v50 = vld [vmem:[%s684_s3] sm:$0xff]   ;;  %vm395_vm6 = vmand %vm393_vm4, %vm394_vm5 }
   0xd   :  { %440 = vmatpush3.bf16.xpose.msra.mxu0 %v159_v11  ;;  %79 = vperm.xlu0 %492, %v61_v19   ;;  %v144_v44 = vsel %vm127_vm0, %v44_v41, 0  ;;  %v141_v46 = vsel %vm127_vm0, %v43_v45, 0  ;;  %v341_v43 = vld [vmem:[%s685_s5] sm:$0x3] }
   0xe   :  { %483 = vmatprep.subr.msk.bf16.mxu0 %vm127_vm0, %v48_v12  ;;  %84 = vperm.xlu1 %493, %v62_v20  }
   0xf   :  { %469 = vmatprep.mubr.msk.bf16.mxu1 %vm279_vm1, %v498_v50 }
  0x11   :  { %69 = vperm.xlu0 %492, %v59_v23   ;;  %v499_v23 = vld [vmem:[%s684_s3 + $0x8] sm:$0xff]  }
  0x12   :  { %74 = vperm.xlu1 %493, %v60_v24   ;;  %v501_v24 = vmov 0.0  }
  0x15   :  { %442 = vmatpush3.bf16.xpose.msra.mxu0 %v156_v21  ;;  %261 = vperm.xlu0 %492, %v247_v27  }
  0x16   :  { %484 = vmatprep.subr.msk.bf16.mxu0 %vm127_vm0, %v47_v22  ;;  %266 = vperm.xlu1 %493, %v248_v28  }
  0x19   :  { %251 = vperm.xlu0 %492, %v245_v31  }
  0x1a   :  { %256 = vperm.xlu1 %493, %v246_v32  }
  0x1d   :  { %444 = vmatpush3.bf16.xpose.msra.mxu0 %v153_v29  ;;  %345 = vperm.xlu0 %492, %v342_v35  }
  0x1e   :  { %485 = vmatprep.subr.msk.bf16.mxu0 %vm127_vm0, %v46_v30 }
  0x25   :  { %446 = vmatpush3.bf16.xpose.msra.mxu0 %v150_v36 }
  0x26   :  { %486 = vmatprep.subr.msk.bf16.mxu0 %vm127_vm0, %v45_v37 }
  0x2d   :  { %448 = vmatpush3.bf16.xpose.msra.mxu0 %v147_v40 }
  0x2e   :  { %487 = vmatprep.subr.msk.bf16.mxu0 %vm127_vm0, %v44_v41 }
  0x35   :  { %450 = vmatpush3.bf16.xpose.msra.mxu0 %v144_v44 }
  0x36   :  { %488 = vmatprep.subr.msk.bf16.mxu0 %vm127_vm0, %v43_v45 }
  0x3d   :  { %452 = vmatpush3.bf16.xpose.msra.mxu0 %v141_v46 }
  0x44   :  { %454 = vmatmul.mubr.msk.bf16.vlgmr.msra.gmra.mxu0 %vm127_vm0, %v495_v47  ;;  %v396_v47 = vld [vmem:[%s686_s7] sm:$0x3] }
  0x45   :  { %457 = vmatprep.mubr.msk.bf16.mxu0 %vm127_vm0, %v496_v48 }
  0x4c   :  { %458 = vmatmul.mubr.msk.bf16.gmra.mxu0 %vm127_vm0, %v497_v49 }
  0x80   :  { %v100_v53 = vpop.permute.xlu0 %99 }
  0x81   :  { %v90_v51 = vpop.permute.xlu1 %89 }
  0x84   :  { %v105_v58 = vpop.permute.xlu0 %104 }
  0x85   :  { %v95_v56 = vpop.permute.xlu1 %94 }
  0x88   :  { %v80_v2 = vpop.permute.xlu0 %79 }
  0x89   :  { %v85_v62 = vpop.permute.xlu1 %84 }
  0x8c   :  { %v70_v16 = vpop.permute.xlu0 %69 }
  0x8d   :  { %v75_v12 = vpop.permute.xlu1 %74 }
  0x90   :  { %v262_v25 = vpop.permute.xlu0 %261 }
  0x91   :  { %v267_v26 = vpop.permute.xlu1 %266 }
  0x94   :  { %v252_v31 = vpop.permute.xlu0 %251 }
  0x95   :  { %v257_v33 = vpop.permute.xlu1 %256 }
  0x98   :  { %v346_v44 = vpop.permute.xlu0 %345 }
 0x104   :  { %v455_v52 = vpop.f32.mrf.mxu0 }
 0x105   :  { %v207_v8 = vadd.f32 %v455_v52, %v80_v2 }
 0x106   :  { %v198_v54 = vpop.f32.mrf.mxu0 }
 0x107   :  { %v231_v17 = vmax.f32 %v207_v8, 0.0  ;;  %v199_v18 = vadd.f32 %v198_v54, %v70_v16 }
 0x108   :  { %v456_v55 = vpop.f32.mrf.mxu0 }
 0x109   :  { %v210_v4 = vadd.f32 %v456_v55, %v85_v62  ;;  %v229_v21 = vmax.f32 %v199_v18, 0.0 }
 0x10a   :  { %v201_v57 = vpop.f32.mrf.mxu0 }
 0x10b   :  { %v232_v13 = vmax.f32 %v210_v4, 0.0  ;;  %v202_v14 = vadd.f32 %v201_v57, %v75_v12 }
 0x10c   :  { %v459_v59 = vpop.f32.mrf.mxu0 }
 0x10d   :  { %v223_v61 = vadd.f32 %v459_v59, %v100_v53  ;;  %v238_v19 = vpack.c.bf16 %v232_v13, %v231_v17  ;;  %v230_v20 = vmax.f32 %v202_v14, 0.0 }
 0x10e   :  { %v214_v60 = vpop.f32.mrf.mxu0 }
 0x10f   :  { %v215_v0 = vadd.f32 %v214_v60, %v90_v51  ;;  %v235_v5 = vmax.f32 %v223_v61, 0.0  ;;  %v237_v22 = vpack.c.bf16 %v230_v20, %v229_v21 }
 0x110   :  { %v460_v63 = vpop.f32.mrf.mxu0 }
 0x111   :  { %v226_v1 = vadd.f32 %v460_v63, %v105_v58  ;;  %v233_v9 = vmax.f32 %v215_v0, 0.0 }
 0x112   :  { %v217_v3 = vpop.f32.mrf.mxu0 }
 0x113   :  { %v236_v6 = vmax.f32 %v226_v1, 0.0  ;;  %v218_v7 = vadd.f32 %v217_v3, %v95_v56 }
 0x115   :  { %v234_v10 = vmax.f32 %v218_v7, 0.0  ;;  %v240_v11 = vpack.c.bf16 %v236_v6, %v235_v5 }
 0x117   :  { %v239_v15 = vpack.c.bf16 %v234_v10, %v233_v9  ;;  %461 = vmatprep.subr.bf16.mxu1 %v240_v11 }
 0x118   :  { %462 = vmatpush3.bf16.msra.mxu1 %v240_v11 }
 0x119   :  { %463 = vmatprep.subr.bf16.mxu1 %v239_v15 }
 0x11c   :  { %464 = vmatpush3.bf16.msra.mxu1 %v239_v15 }
 0x11d   :  { %465 = vmatprep.subr.bf16.mxu1 %v238_v19 }
 0x120   :  { %466 = vmatpush3.bf16.msra.mxu1 %v238_v19 }
 0x121   :  { %467 = vmatprep.subr.bf16.mxu1 %v237_v22 }
 0x124   :  { %468 = vmatpush3.bf16.msra.mxu1 %v237_v22 }
 0x125   :  { %473 = vmatprep.subr.bf16.mxu1 %v501_v24 }
 0x127   :  { %470 = vmatmul.mubr.msk.bf16.vlgmr.msra.gmra.mxu1 %vm279_vm1, %v499_v23 }
 0x128   :  { %477 = vmatprep.mubr.msk.bf16.mxu1 %vm502_vm2, %v501_v24 }
 0x1e7   :  { %v471_v27 = vpop.f32.mrf.mxu1 }
 0x1e8   :  { %v329_v29 = vadd.f32 %v471_v27, %v262_v25 }
 0x1e9   :  { %v320_v28 = vpop.f32.mrf.mxu1 }
 0x1ea   :  { %v337_v35 = vmax.f32 %v329_v29, 0.0  ;;  %v321_v36 = vadd.f32 %v320_v28, %v252_v31 }
 0x1eb   :  { %v472_v30 = vpop.f32.mrf.mxu1 }
 0x1ec   :  { %v332_v32 = vadd.f32 %v472_v30, %v267_v26  ;;  %v335_v41 = vmax.f32 %v321_v36, 0.0 }
 0x1ed   :  { %v323_v34 = vpop.f32.mrf.mxu1 }
 0x1ee   :  { %v338_v37 = vmax.f32 %v332_v32, 0.0  ;;  %v324_v38 = vadd.f32 %v323_v34, %v257_v33 }
 0x1f0   :  { %v340_v39 = vpack.c.bf16 %v338_v37, %v337_v35  ;;  %v336_v40 = vmax.f32 %v324_v38, 0.0 }
 0x1f2   :  { %474 = vmatpush3.bf16.msra.mxu1 %v340_v39  ;;  %v339_v42 = vpack.c.bf16 %v336_v40, %v335_v41 }
 0x1f3   :  { %475 = vmatprep.subr.bf16.mxu1 %v501_v24 }
 0x1f6   :  { %476 = vmatpush3.bf16.msra.mxu1 %v339_v42 }
 0x1f9   :  { %478 = vmatmul.mubr.msk.bf16.vlgmr.msra.gmra.mxu1 %vm348_vm3, %v341_v43 }
 0x2b9   :  { %v386_v45 = vpop.f32.mrf.mxu1 }
 0x2ba   :  { %v387_v46 = vadd.f32 %v386_v45, %v346_v44 }
 0x2bb   :  { %v479_v48 = vpop.f32.mrf.mxu1 }
 0x2bc   :  { %v392_v49 = vpack.c.bf16 %v387_v46, %v387_v46 }
 0x2bd   :  { %v389_v50 = vpop.f32.mrf.mxu1 }
 0x2be   :  { %v397_v51 = vsel %vm395_vm6, %v392_v49, %v396_v47 }
 0x2bf   :  { %398 = vst [vmem:[%s686_s7] sm:$0x3] %v397_v51  ;;  %v480_v52 = vpop.f32.mrf.mxu1 }

</bundles_post_ra>
